<compile_context>
chip_gen: v7x
topology: tpu7x:2x2x1
jax: 0.10.0
libtpu: 0.0.40
codegen_flags: <defaults>
</compile_context>

<pallas_src>
import functools

import jax
import jax.numpy as jnp
from jax.experimental import pallas as pl
from jax.experimental.pallas import tpu as pltpu


def _cdiv(a, b):
    return -(-a // b)


def _tpu_defaults():
    """(physical VMEM bytes, tensorcores per chip) with safe fallbacks."""
    vmem_cap = 64 * 1024 * 1024          # conservative fallback (v7x-sized)
    try:
        vmem_cap = int(pltpu.get_tpu_info().vmem_capacity_bytes)
    except Exception:
        pass
    n_cores = 1
    try:
        kind = jax.devices()[0].device_kind.lower()
        if "v7" in kind:                 # v7x: 2 TensorCores per chip
            n_cores = 2
    except Exception:
        pass
    return vmem_cap, n_cores


def _ls_ce_kernel(logits_ref, tgt_ref, nll_ref, sm_ref, *,
                  n_rows, block_n, blocks_per_shard, n_classes):
    """Processes one (block_n, C) row-tile of logits.

    Accumulates the per-shard sum of NLL (-log_softmax at the target index)
    and of the smoothing term (-sum_c log_softmax) into the resident (1,1,1)
    output blocks; the scalar e/C weighting happens in the wrapper.
    """
    s = pl.program_id(0)   # row-shard axis (core-parallel on v7x)
    k = pl.program_id(1)   # reduction axis over row blocks within the shard

    @pl.when(k == 0)
    def _():
        nll_ref[...] = jnp.zeros_like(nll_ref)
        sm_ref[...] = jnp.zeros_like(sm_ref)

    x = logits_ref[...]                                   # (block_n, C) native dtype
    tgt = tgt_ref[...]                                    # (block_n, 1) int32

    # Reductions straight off the native-dtype tile; the f32 cast / (x - m)
    # subtraction live inside each reduction's producer, never as a stored
    # tile.  log_softmax itself is never materialized:
    #   lse    = m + log(sum exp(x - m))
    #   nll    = lse - x[target]
    #   smooth = C * lse - sum(x)
    m = jnp.max(x, axis=-1, keepdims=True).astype(jnp.float32)          # (bn,1)
    sum_x = jnp.sum(x.astype(jnp.float32), axis=-1, keepdims=True)      # (bn,1)
    se = jnp.sum(jnp.exp(x.astype(jnp.float32) - m),
                 axis=-1, keepdims=True)                                # (bn,1)
    col = jax.lax.broadcasted_iota(jnp.int32, x.shape, 1)
    x_t = jnp.sum(jnp.where(col == tgt, x.astype(jnp.float32), 0.0),
                  axis=-1, keepdims=True)                               # (bn,1)

    lse = m + jnp.log(se)
    nll = lse - x_t
    smooth = float(n_classes) * lse - sum_x

    # Mask rows past the true N (ragged trailing block / clamped OOB block).
    # Keep this AFTER lse/exp so garbage from unpadded ragged reads (possibly
    # NaN/Inf) is selected away, never multiplied in.
    row0 = (s * blocks_per_shard + k) * block_n
    row_idx = row0 + jax.lax.broadcasted_iota(jnp.int32, (block_n, 1), 0)
    valid = row_idx < n_rows
    nll = jnp.where(valid, nll, 0.0)
    smooth = jnp.where(valid, smooth, 0.0)

    nll_ref[...] += jnp.sum(nll, axis=0, keepdims=True)[None]           # (1,1,1)
    sm_ref[...] += jnp.sum(smooth, axis=0, keepdims=True)[None]         # (1,1,1)


def label_smoothing_cross_entropy(output, target, *, e=0.1, reduction="mean",
                                  block_rows=None, num_row_shards=None):
    """Pallas equivalent of LabelSmoothingCrossEntropy(e, reduction)(output, target)."""
    # TODO(synk): reduction='none' (per-row loss tensor) is not implemented.
    assert reduction in ("mean", "sum")
    N, C = output.shape
    itemsize = jnp.dtype(output.dtype).itemsize
    # Sublane packing: 8 rows for 4-byte, 16 for 2-byte, 32 for 1-byte dtypes.
    packing = max(1, 4 // itemsize) * 8

    vmem_cap, n_cores = _tpu_defaults()

    if num_row_shards is None:
        num_row_shards = n_cores          # 2 only on v7x; 1 on v5e/v6e

    if block_rows is None:
        # Live VMEM per step ≈ double-buffered input tile + ~2 tile-sized f32
        # reduction producers; keep under ~40% of physical VMEM.
        budget = int(vmem_cap * 0.4)
        per_row = C * (2 * itemsize + 2 * 4)
        rows = (budget // max(per_row, 1)) // packing * packing
        rows = max(rows, packing)
        rows = min(rows, 512 if vmem_cap <= 64 * 1024 * 1024 else 1024)
        rows = min(rows, _cdiv(N, packing) * packing)
        block_rows = rows
    block_n = int(block_rows)

    n_blocks = _cdiv(N, block_n)
    num_shards = max(1, min(int(num_row_shards), n_blocks))
    blocks_per_shard = _cdiv(n_blocks, num_shards)

    tgt = target.astype(jnp.int32).reshape(N, 1)     # tiny; logits stay unpadded

    kernel = functools.partial(_ls_ce_kernel, n_rows=N, block_n=block_n,
                               blocks_per_shard=blocks_per_shard, n_classes=C)

    def in_row_map(s, k):
        # Clamp fully-out-of-range trailing blocks (possible when n_blocks is
        # not a multiple of num_shards); those rows are masked in the kernel.
        return (jnp.minimum(s * blocks_per_shard + k, n_blocks - 1), 0)

    est_live = 2 * block_n * C * itemsize + 2 * block_n * C * 4 + (1 << 20)
    vmem_limit = int(min(max(vmem_cap - (16 << 20), 32 << 20),
                         max(est_live + (4 << 20), 32 << 20)))

    if num_shards > 1 and n_cores > 1:
        dim0 = getattr(pltpu, "CORE_PARALLEL", "parallel")   # real cross-TC split (v7x)
    elif num_shards > 1:
        dim0 = "parallel"
    else:
        dim0 = "arbitrary"

    cost = pl.CostEstimate(
        flops=6 * N * C,
        transcendentals=N * C,
        bytes_accessed=N * C * itemsize + N * 4 + num_shards * 8,
    )

    nll_sums, sm_sums = pl.pallas_call(
        kernel,
        out_shape=(jax.ShapeDtypeStruct((num_shards, 1, 1), jnp.float32),
                   jax.ShapeDtypeStruct((num_shards, 1, 1), jnp.float32)),
        grid_spec=pltpu.PrefetchScalarGridSpec(
            num_scalar_prefetch=0,
            grid=(num_shards, blocks_per_shard),
            in_specs=[
                pl.BlockSpec((block_n, C), in_row_map),
                pl.BlockSpec((block_n, 1), in_row_map),
            ],
            out_specs=[
                pl.BlockSpec((1, 1, 1), lambda s, k: (s, 0, 0)),
                pl.BlockSpec((1, 1, 1), lambda s, k: (s, 0, 0)),
            ],
        ),
        compiler_params=pltpu.CompilerParams(
            dimension_semantics=(dim0, "arbitrary"),
            vmem_limit_bytes=vmem_limit,
        ),
        cost_estimate=cost,
    )(output, tgt)

    nll_total = jnp.sum(nll_sums)
    sm_total = jnp.sum(sm_sums)
    if reduction == "mean":
        nll_total = nll_total / N
        sm_total = sm_total / N
    return (1.0 - e) * nll_total + e * (sm_total / C)


def _reference(output, target, e=0.1, reduction="mean"):
    log_preds = jax.nn.log_softmax(output.astype(jnp.float32), axis=-1)
    c = output.shape[-1]
    per_row_smooth = -jnp.sum(log_preds, axis=-1)
    per_row_nll = -jnp.take_along_axis(
        log_preds, target[:, None].astype(jnp.int32), axis=-1)[:, 0]
    red = jnp.mean if reduction == "mean" else jnp.sum
    return (1.0 - e) * red(per_row_nll) + e * (red(per_row_smooth) / c)


if __name__ == "__main__":
    key = jax.random.PRNGKey(0)
    k1, k2, k3, k4, k5, k6 = jax.random.split(key, 6)

    # Case 1: small shape, single tile / single shard, 'mean' reduction.
    N, C = 16, 32
    logits = jax.random.normal(k1, (N, C), dtype=jnp.float32)
    target = jax.random.randint(k2, (N,), 0, C, dtype=jnp.int32)
    out = jax.block_until_ready(
        label_smoothing_cross_entropy(logits, target, e=0.1))
    ref = _reference(logits, target, e=0.1)
    assert jnp.allclose(out, ref, atol=1e-5, rtol=1e-5), (out, ref)

    # Case 2: N not a multiple of the tile (ragged, un-padded trailing block),
    # 'sum' reduction.
    N2, C2 = 50, 40
    logits2 = jax.random.normal(k3, (N2, C2), dtype=jnp.float32)
    target2 = jax.random.randint(k4, (N2,), 0, C2, dtype=jnp.int32)
    out2 = jax.block_until_ready(
        label_smoothing_cross_entropy(logits2, target2, e=0.1,
                                      reduction="sum", block_rows=8))
    ref2 = _reference(logits2, target2, e=0.1, reduction="sum")
    assert jnp.allclose(out2, ref2, atol=1e-4, rtol=1e-4), (out2, ref2)

    # Case 3: bf16 logits, 2 row shards with an odd block count (exercises the
    # clamped fully-out-of-range trailing block and the shard axis).
    N3, C3 = 40, 128
    logits3 = jax.random.normal(k5, (N3, C3), dtype=jnp.bfloat16)
    target3 = jax.random.randint(k6, (N3,), 0, C3, dtype=jnp.int32)
    out3 = jax.block_until_ready(
        label_smoothing_cross_entropy(logits3, target3, e=0.1,
                                      block_rows=16, num_row_shards=2))
    ref3 = _reference(logits3, target3, e=0.1)
    assert jnp.allclose(out3, ref3, atol=1e-3, rtol=1e-3), (out3, ref3)

    print("KERNEL_OK")
</pallas_src>

<mosaic_0001>
module attributes {stable_mosaic.version = 11 : i64} {
  func.func @_ls_ce_kernel(%arg0: i32, %arg1: i32, %arg2: memref<16x32xf32, #tpu.memory_space<vmem>>, %arg3: memref<16x1xi32, #tpu.memory_space<vmem>>, %arg4: memref<1x1x1xf32, #tpu.memory_space<vmem>>, %arg5: memref<1x1x1xf32, #tpu.memory_space<vmem>>) attributes {dimension_semantics = [#tpu.dimension_semantics<arbitrary>, #tpu.dimension_semantics<arbitrary>], iteration_bounds = array<i64: 1, 1>, scalar_prefetch = 0 : i64, scratch_operands = 0 : i64, tpu.core_type = #tpu.core_type<tc>, window_params = [{transform_indices = @transform_0, window_bounds = array<i64: 16, 32>}, {transform_indices = @transform_1, window_bounds = array<i64: 16, 1>}, {transform_indices = @transform_2, window_bounds = array<i64: 1, 1, 1>}, {transform_indices = @transform_3, window_bounds = array<i64: 1, 1, 1>}]} {
    %c0_i32 = arith.constant 0 : i32
    %0 = arith.cmpi eq, %arg1, %c0_i32 : i32
    %1 = arith.extui %0 : i1 to i32
    %c0_i32_0 = arith.constant 0 : i32
    %2 = arith.cmpi ne, %1, %c0_i32_0 : i32
    scf.if %2 {
      %cst_26 = arith.constant 0.000000e+00 : f32
      %51 = vector.broadcast %cst_26 : f32 to vector<1x1x1xf32>
      %c0_27 = arith.constant 0 : index
      %c0_28 = arith.constant 0 : index
      %c0_29 = arith.constant 0 : index
      %52 = vector.load %arg4[%c0_27, %c0_28, %c0_29] : memref<1x1x1xf32, #tpu.memory_space<vmem>>, vector<1x1x1xf32>
      tpu.vector_store %arg4[%c0_27, %c0_28, %c0_29], %51 {strides = array<i32>} : memref<1x1x1xf32, #tpu.memory_space<vmem>>, vector<1x1x1xf32>,
      %cst_30 = arith.constant 0.000000e+00 : f32
      %53 = vector.broadcast %cst_30 : f32 to vector<1x1x1xf32>
      %c0_31 = arith.constant 0 : index
      %c0_32 = arith.constant 0 : index
      %c0_33 = arith.constant 0 : index
      %54 = vector.load %arg5[%c0_31, %c0_32, %c0_33] : memref<1x1x1xf32, #tpu.memory_space<vmem>>, vector<1x1x1xf32>
      tpu.vector_store %arg5[%c0_31, %c0_32, %c0_33], %53 {strides = array<i32>} : memref<1x1x1xf32, #tpu.memory_space<vmem>>, vector<1x1x1xf32>,
    } else {
    }
    %c0 = arith.constant 0 : index
    %c0_1 = arith.constant 0 : index
    %3 = vector.load %arg2[%c0, %c0_1] : memref<16x32xf32, #tpu.memory_space<vmem>>, vector<16x32xf32>
    %c0_2 = arith.constant 0 : index
    %c0_3 = arith.constant 0 : index
    %4 = vector.load %arg3[%c0_2, %c0_3] : memref<16x1xi32, #tpu.memory_space<vmem>>, vector<16x1xi32>
    %cst = arith.constant dense<0xFF800000> : vector<16xf32>
    %5 = vector.multi_reduction <maximumf>, %3, %cst [1] : vector<16x32xf32> to vector<16xf32>
    %6 = vector.shape_cast %5 : vector<16xf32> to vector<16x1xf32>
    %cst_4 = arith.constant dense<0.000000e+00> : vector<16xf32>
    %7 = vector.multi_reduction <add>, %3, %cst_4 [1] : vector<16x32xf32> to vector<16xf32>
    %8 = vector.shape_cast %7 : vector<16xf32> to vector<16x1xf32>
    %9 = vector.broadcast %6 : vector<16x1xf32> to vector<16x32xf32>
    %10 = arith.subf %3, %9 : vector<16x32xf32>
    %11 = math.exp %10 : vector<16x32xf32>
    %cst_5 = arith.constant dense<0.000000e+00> : vector<16xf32>
    %12 = vector.multi_reduction <add>, %11, %cst_5 [1] : vector<16x32xf32> to vector<16xf32>
    %13 = vector.shape_cast %12 : vector<16xf32> to vector<16x1xf32>
    %14 = tpu.iota {dimensions = array<i32: 1>} : vector<16x32xi32>
    %15 = vector.broadcast %4 : vector<16x1xi32> to vector<16x32xi32>
    %16 = arith.cmpi eq, %14, %15 : vector<16x32xi32>
    %cst_6 = arith.constant 0.000000e+00 : f32
    %17 = vector.broadcast %cst_6 : f32 to vector<16x32xf32>
    %18 = arith.select %16, %3, %17 : vector<16x32xi1>, vector<16x32xf32>
    %cst_7 = arith.constant dense<0.000000e+00> : vector<16xf32>
    %19 = vector.multi_reduction <add>, %18, %cst_7 [1] : vector<16x32xf32> to vector<16xf32>
    %20 = vector.shape_cast %19 : vector<16xf32> to vector<16x1xf32>
    %21 = math.log %13 : vector<16x1xf32>
    %22 = arith.addf %6, %21 : vector<16x1xf32>
    %23 = arith.subf %22, %20 : vector<16x1xf32>
    %cst_8 = arith.constant 3.200000e+01 : f32
    %24 = vector.broadcast %cst_8 : f32 to vector<16x1xf32>
    %25 = arith.mulf %24, %22 : vector<16x1xf32>
    %26 = arith.subf %25, %8 : vector<16x1xf32>
    %c1_i32 = arith.constant 1 : i32
    %27 = arith.muli %arg0, %c1_i32 : i32
    %28 = arith.addi %27, %arg1 : i32
    %c16_i32 = arith.constant 16 : i32
    %29 = arith.muli %28, %c16_i32 : i32
    %30 = tpu.iota {dimensions = array<i32: 0>} : vector<16x1xi32>
    %31 = vector.broadcast %29 : i32 to vector<16x1xi32>
    %32 = arith.addi %31, %30 : vector<16x1xi32>
    %c16_i32_9 = arith.constant 16 : i32
    %33 = vector.broadcast %c16_i32_9 : i32 to vector<16x1xi32>
    %34 = arith.cmpi slt, %32, %33 : vector<16x1xi32>
    %cst_10 = arith.constant 0.000000e+00 : f32
    %35 = vector.broadcast %cst_10 : f32 to vector<16x1xf32>
    %36 = arith.select %34, %23, %35 : vector<16x1xi1>, vector<16x1xf32>
    %cst_11 = arith.constant 0.000000e+00 : f32
    %37 = vector.broadcast %cst_11 : f32 to vector<16x1xf32>
    %38 = arith.select %34, %26, %37 : vector<16x1xi1>, vector<16x1xf32>
    %c0_12 = arith.constant 0 : index
    %c0_13 = arith.constant 0 : index
    %c0_14 = arith.constant 0 : index
    %39 = vector.load %arg4[%c0_12, %c0_13, %c0_14] : memref<1x1x1xf32, #tpu.memory_space<vmem>>, vector<1x1x1xf32>
    %cst_15 = arith.constant dense<0.000000e+00> : vector<1xf32>
    %40 = vector.multi_reduction <add>, %36, %cst_15 [0] : vector<16x1xf32> to vector<1xf32>
    %41 = vector.shape_cast %40 : vector<1xf32> to vector<1x1xf32>
    %42 = vector.shape_cast %41 : vector<1x1xf32> to vector<1x1x1xf32>
    %43 = arith.addf %39, %42 : vector<1x1x1xf32>
    %c0_16 = arith.constant 0 : index
    %c0_17 = arith.constant 0 : index
    %c0_18 = arith.constant 0 : index
    %44 = vector.load %arg4[%c0_16, %c0_17, %c0_18] : memref<1x1x1xf32, #tpu.memory_space<vmem>>, vector<1x1x1xf32>
    tpu.vector_store %arg4[%c0_16, %c0_17, %c0_18], %43 {strides = array<i32>} : memref<1x1x1xf32, #tpu.memory_space<vmem>>, vector<1x1x1xf32>,
    %c0_19 = arith.constant 0 : index
    %c0_20 = arith.constant 0 : index
    %c0_21 = arith.constant 0 : index
    %45 = vector.load %arg5[%c0_19, %c0_20, %c0_21] : memref<1x1x1xf32, #tpu.memory_space<vmem>>, vector<1x1x1xf32>
    %cst_22 = arith.constant dense<0.000000e+00> : vector<1xf32>
    %46 = vector.multi_reduction <add>, %38, %cst_22 [0] : vector<16x1xf32> to vector<1xf32>
    %47 = vector.shape_cast %46 : vector<1xf32> to vector<1x1xf32>
    %48 = vector.shape_cast %47 : vector<1x1xf32> to vector<1x1x1xf32>
    %49 = arith.addf %45, %48 : vector<1x1x1xf32>
    %c0_23 = arith.constant 0 : index
    %c0_24 = arith.constant 0 : index
    %c0_25 = arith.constant 0 : index
    %50 = vector.load %arg5[%c0_23, %c0_24, %c0_25] : memref<1x1x1xf32, #tpu.memory_space<vmem>>, vector<1x1x1xf32>
    tpu.vector_store %arg5[%c0_23, %c0_24, %c0_25], %49 {strides = array<i32>} : memref<1x1x1xf32, #tpu.memory_space<vmem>>, vector<1x1x1xf32>,
    return
  }
  func.func @transform_0(%arg0: i32, %arg1: i32) -> (i32, i32) {
    %c1_i32 = arith.constant 1 : i32
    %0 = arith.muli %arg0, %c1_i32 : i32
    %1 = arith.addi %0, %arg1 : i32
    %c0_i32 = arith.constant 0 : i32
    %2 = arith.minsi %1, %c0_i32 : i32
    %c0_i32_0 = arith.constant 0 : i32
    %c0_i32_1 = arith.constant 0 : i32
    return %2, %c0_i32_0 : i32, i32
  }
  func.func @transform_1(%arg0: i32, %arg1: i32) -> (i32, i32) {
    %c1_i32 = arith.constant 1 : i32
    %0 = arith.muli %arg0, %c1_i32 : i32
    %1 = arith.addi %0, %arg1 : i32
    %c0_i32 = arith.constant 0 : i32
    %2 = arith.minsi %1, %c0_i32 : i32
    %c0_i32_0 = arith.constant 0 : i32
    %c0_i32_1 = arith.constant 0 : i32
    return %2, %c0_i32_0 : i32, i32
  }
  func.func @transform_2(%arg0: i32, %arg1: i32) -> (i32, i32, i32) {
    %c0_i32 = arith.constant 0 : i32
    %c0_i32_0 = arith.constant 0 : i32
    %c0_i32_1 = arith.constant 0 : i32
    return %arg0, %c0_i32, %c0_i32_0 : i32, i32, i32
  }
  func.func @transform_3(%arg0: i32, %arg1: i32) -> (i32, i32, i32) {
    %c0_i32 = arith.constant 0 : i32
    %c0_i32_0 = arith.constant 0 : i32
    %c0_i32_1 = arith.constant 0 : i32
    return %arg0, %c0_i32, %c0_i32_0 : i32, i32, i32
  }
}

</mosaic_0001>

<bundles_post_ra>
// kernel: tpu_custom_call.1
= control target key start
LH: loop header
LB: loop body
LE: loop exit
PB: predicated region body
PF: predicated region fallthrough
CT: control target
= control target key end

     0   :  { %9 = vsyncpa [#allocation3], 0  ;;  %vm90_vm0 = vcmask 261120   ;;  %v282_v4 = vmov 0   ;;  %s362_s0 = inlined_call_operand.vmem [shape: f32[16,32], index: 0, kind: input, shape index: {}]   ;;  %s363_s1 = inlined_call_operand.vmem [shape: s32[16,1], index: 1, kind: input, shape index: {}]   ;;  %s364_s2 = inlined_call_operand.hbm [shape: f32[1,1,1], index: 2, kind: output, shape index: {0}]   ;;  %s365_s3 = inlined_call_operand.hbm [shape: f32[1,1,1], index: 3, kind: output, shape index: {1}]  }
   0x1   :  { %v86_v0 = vld [vmem:[%s362_s0] sm:$0xff]  ;;  %v87_v1 = vld [vmem:[%s362_s0 + $0x8] sm:$0xff]  ;;  %224 = vset.pattern.permute.xlu1 %v282_v4  ;;  %225 = vset.pattern.permute.xlu0 %v282_v4 }
   0x2   :  { %v88_v2 = vld [vmem:[%s363_s1] sm:$0xff]  ;;  %v91_v3 = vsel %vm90_vm0, %v86_v0, -inf }
   0x3   :  { %10 = vsyncpa [#allocation5], 0  ;;  %92 = vmax.xlane.f32.xlu0 %v91_v3  ;;  %118 = vperm.xlu1 %224, %v88_v2   ;;  %v94_v5 = vsel %vm90_vm0, %v87_v1, -inf  ;;  %v89_v6 = vld [vmem:[%s363_s1 + $0x8] sm:$0xff]  ;;  %v115_v13 = vlaneseq  ;;  %v97_v18 = vsel %vm90_vm0, %v86_v0, 0.0  ;;  %v100_v22 = vsel %vm90_vm0, %v87_v1, 0.0 }
   0x4   :  { %vm83_vm3 = vcmask 0   ;;  %v283_v27 = vmov 0.0   ;;  %s284_s0 = smov [#allocation2]   ;;  %s285_s20 = smov [#allocation4]  }
   0x5   :  { %v116_v17 = vand.u32 127, %v115_v13  ;;  %84 = vst.msk [vmem:[#allocation2] sm:$0x1] %vm83_vm3, %v283_v27  ;;  %85 = vst.msk [vmem:[#allocation4] sm:$0x1] %vm83_vm3, %v283_v27  ;;  %s186_s1 = sshll.u32 %s284_s0, 4  ;;  %s187_s1 = int_to_ptr.vmem [resolvable:$true] %s186_s1 }
   0x6   :  { %s196_s21 = sshll.u32 %s285_s20, 4  ;;  %s234_s22 = scalar_lea.vmem %s187_s1, 16  ;;  %s329_s21 = int_to_ptr.vmem [resolvable:$true] %s196_s21 }
   0x7   :  { %95 = vmax.xlane.f32.xlu0 %v94_v5  ;;  %121 = vperm.xlu1 %224, %v89_v6   ;;  %p235_p0 = scmp.ne.s32.totalorder %s187_s1, %s234_s22  ;;  %s238_s23 = scalar_lea.vmem %s187_s1, 32 }
   0x8   :  { %p239_p1 = scmp.lt.s32.totalorder %s187_s1, %s187_s1  ;;  %p240_p2 = scmp.lt.s32.totalorder %s238_s23, %s234_s22 }
   0xa   :  { %p241_p3 = por %p240_p2, %p239_p1 }
   0xc   :  { %v159_v57 = vld [vmem:[#allocation2] sm:$0x1]  ;;  %v170_v60 = vld [vmem:[#allocation4] sm:$0x1]  ;;  %p242_p4 = pnand %p241_p3, %p235_p0 }
  0x82   :  { %v119_v15 = vpop.permute.xlu1 %118 }
  0x83   :  { %vm123_vm1 = vcmp.eq.s32.totalorder %v116_v17, %v119_v15 }
  0x84   :  { %v125_v23 = vsel %vm123_vm1, %v86_v0, 0.0 }
  0x85   :  { %v127_v24 = vsel %vm90_vm0, %v125_v23, 0.0 }
  0x86   :  { %v122_v21 = vpop.permute.xlu1 %121 }
  0x87   :  { %vm124_vm2 = vcmp.eq.s32.totalorder %v116_v17, %v122_v21 }
  0x88   :  { %v126_v25 = vsel %vm124_vm2, %v87_v1, 0.0 }
  0x89   :  { %v130_v26 = vsel %vm90_vm0, %v126_v25, 0.0 }
  0x90   :  { %v93_v7 = vpop.xlane.xlu0 %92 }
  0x91   :  { %v103_v8 = vsub.f32 %v86_v0, %v93_v7 }
  0x93   :  { %v105_v9 = vmul.f32 1.442695, %v103_v8 }
  0x94   :  { %v96_v10 = vpop.xlane.xlu0 %95 }
  0x95   :  { %226 = vpow2.f32 %v105_v9  ;;  %v104_v11 = vsub.f32 %v87_v1, %v96_v10 }
  0x97   :  { %v107_v12 = vmul.f32 1.442695, %v104_v11 }
  0x99   :  { %228 = vpow2.f32 %v107_v12 }
  0x9f   :  { %v227_v14 = vpop.eup %226 }
  0xa0   :  { %v109_v16 = vsel %vm90_vm0, %v227_v14, 0.0 }
  0xa1   :  { %110 = vadd.xlane.f32.xlu0 %v109_v16 }
  0xa3   :  { %v229_v19 = vpop.eup %228 }
  0xa4   :  { %v112_v20 = vsel %vm90_vm0, %v229_v19, 0.0 }
  0xa5   :  { %113 = vadd.xlane.f32.xlu1 %v112_v20  ;;  %98 = vadd.xlane.f32.xlu0 %v97_v18 }
  0xa9   :  { %101 = vadd.xlane.f32.xlu0 %v100_v22 }
  0xad   :  { %128 = vadd.xlane.f32.xlu0 %v127_v24 }
  0xb1   :  { %131 = vadd.xlane.f32.xlu0 %v130_v26 }
 0x12e   :  { %v111_v28 = vpop.xlane.xlu0 %110 }
 0x12f   :  { %230 = vlog2.f32 %v111_v28 }
 0x132   :  { %v114_v29 = vpop.xlane.xlu1 %113  ;;  %v99_v30 = vpop.xlane.xlu0 %98 }
 0x133   :  { %232 = vlog2.f32 %v114_v29 }
 0x136   :  { %v102_v31 = vpop.xlane.xlu0 %101 }
 0x139   :  { %v231_v32 = vpop.eup %230 }
 0x13a   :  { %v134_v33 = vmul.f32 0.6931472, %v231_v32  ;;  %v129_v34 = vpop.xlane.xlu0 %128 }
 0x13c   :  { %v137_v35 = vadd.f32 %v134_v33, %v93_v7 }
 0x13d   :  { %v233_v36 = vpop.eup %232 }
 0x13e   :  { %v136_v37 = vmul.f32 0.6931472, %v233_v36  ;;  %v141_v38 = vmul.f32 32.0, %v137_v35  ;;  %v132_v40 = vpop.xlane.xlu0 %131  ;;  %v139_v42 = vsub.f32 %v137_v35, %v129_v34 }
 0x140   :  { %v138_v39 = vadd.f32 %v136_v37, %v96_v10  ;;  %v143_v44 = vsub.f32 %v141_v38, %v99_v30 }
 0x142   :  { %v142_v41 = vmul.f32 32.0, %v138_v39  ;;  %v140_v43 = vsub.f32 %v138_v39, %v132_v40 }
 0x144   :  { %v144_v45 = vsub.f32 %v142_v41, %v102_v31  ;;  %v160_v46 = vadd.f32 %v140_v43, %v139_v42 }
 0x146   :  { %v171_v47 = vadd.f32 %v144_v45, %v143_v44  ;;  %v161_v48 = vrot.slane %v160_v46, 4 }
 0x148   :  { %v172_v49 = vrot.slane %v171_v47, 4  ;;  %v162_v50 = vadd.f32 %v161_v48, %v160_v46 }
 0x14a   :  { %v173_v51 = vadd.f32 %v172_v49, %v171_v47  ;;  %v163_v52 = vrot.slane %v162_v50, 2 }
 0x14c   :  { %v174_v53 = vrot.slane %v173_v51, 2  ;;  %v164_v54 = vadd.f32 %v163_v52, %v162_v50 }
 0x14e   :  { %v175_v55 = vadd.f32 %v174_v53, %v173_v51  ;;  %v165_v56 = vrot.slane %v164_v54, 1 }
 0x150   :  { %v176_v58 = vrot.slane %v175_v55, 1  ;;  %v166_v59 = vadd.f32 %v165_v56, %v164_v54 }
 0x152   :  { %v177_v61 = vadd.f32 %v176_v58, %v175_v55  ;;  %v167_v62 = vadd.f32 %v166_v59, %v159_v57 }
 0x154   :  { %169 = vst.msk [vmem:[#allocation2] sm:$0x1] %vm83_vm3, %v167_v62  ;;  %v178_v63 = vadd.f32 %v177_v61, %v170_v60 }
 0x155   :  { %245 = shalt.err (!%p242_p4)
}
 0x156   :  { %s246_s26 = scalar_lea.hbm %s364_s2, 16 }
 0x157   :  { %p247_p5 = scmp.ne.s32.totalorder %s364_s2, %s246_s26  ;;  %p250_p6 = scmp.lt.u32.totalorder %s246_s26, %s364_s2 }
 0x159   :  { %p252_p7 = pnand %p250_p6, %p247_p5 }
 0x15b   :  { %255 = shalt.err (!%p252_p7)
}
 0x15c   :  { %189 = dma.vmem_to_hbm [thread:$0]  %s187_s1, 16, %s364_s2, [#allocation3]   ;;  %179 = vst.msk [vmem:[#allocation4] sm:$0x1] %vm83_vm3, %v178_v63 }
 0x15d   :  { %s256_s6 = scalar_lea.vmem %s329_s21, 16  ;;  %s260_s7 = scalar_lea.vmem %s329_s21, 32 }
 0x15e   :  { %p257_p8 = scmp.ne.s32.totalorder %s329_s21, %s256_s6  ;;  %p261_p9 = scmp.lt.s32.totalorder %s329_s21, %s329_s21 }
 0x15f   :  { %p262_p10 = scmp.lt.s32.totalorder %s260_s7, %s256_s6 }
 0x161   :  { %p263_p11 = por %p262_p10, %p261_p9 }
 0x163   :  { %p264_p12 = pnand %p263_p11, %p257_p8 }
 0x165   :  { %267 = shalt.err (!%p264_p12)
}
 0x166   :  { %s268_s10 = scalar_lea.hbm %s365_s3, 16 }
 0x167   :  { %p269_p13 = scmp.ne.s32.totalorder %s365_s3, %s268_s10  ;;  %p272_p0 = scmp.lt.u32.totalorder %s268_s10, %s365_s3 }
 0x169   :  { %p274_p1 = pnand %p272_p0, %p269_p13 }
 0x16b   :  { %277 = shalt.err (!%p274_p1)
}
 0x16c   :  { %199 = dma.vmem_to_hbm [thread:$0]  %s329_s21, 16, %s365_s3, [#allocation5]  }
 0x16d   :  { %278 = dma.done.wait [#allocation3], 16  }
 0x16e   :  { %279 = vsyncadd [#allocation3], 4294967280 }
 0x16f   :  { %280 = dma.done.wait [#allocation5], 16  }
 0x170   :  { %281 = vsyncadd [#allocation5], 4294967280 }
 0x171   :  { %206 = vsyncpa [#allocation3], 1 }
 0x172   :  { %207 = vsyncpa [#allocation5], 1 }

</bundles_post_ra>
